<compile_context>
chip_gen: v7x
topology: tpu7x:2x2x1
jax: 0.10.0
libtpu: 0.0.40
codegen_flags: <defaults>
</compile_context>

<pallas_src>
import functools

import jax
import jax.numpy as jnp
from jax.experimental import pallas as pl
from jax.experimental.pallas import tpu as pltpu

LANE = 128
SUBLANE = 8


def _round_up(n, m):
    return ((n + m - 1) // m) * m


def _pad2(x, rows, cols):
    r, c = x.shape
    return jnp.pad(x, ((0, rows - r), (0, cols - c)))


def _qnet_kernel(x_ref, w1_ref, w23_ref, w4_ref, b123_ref, b4_ref, o_ref):
    b123 = b123_ref[...]                                   # (3, 128) resident
    # Layer 1: (TB, S) @ (S, 128) + b -> ReLU   (K = state_dim, unpadded)
    h = jnp.dot(x_ref[...], w1_ref[...], preferred_element_type=jnp.float32)
    h = jnp.maximum(h + b123[0:1, :], 0.0)
    # Layer 2: (TB, 128) @ (128, 128) + b -> ReLU
    h = jnp.dot(h, w23_ref[0], preferred_element_type=jnp.float32)
    h = jnp.maximum(h + b123[1:2, :], 0.0)
    # Layer 3: (TB, 128) @ (128, 128) + b -> ReLU
    h = jnp.dot(h, w23_ref[1], preferred_element_type=jnp.float32)
    h = jnp.maximum(h + b123[2:3, :], 0.0)
    # Layer 4 (no activation): (TB, 128) @ (128, Ap) + b -> narrow (TB, 8) store
    h = jnp.dot(h, w4_ref[...], preferred_element_type=jnp.float32)
    o_ref[...] = (h + b4_ref[...]).astype(o_ref.dtype)


def prepare_qnet_params(params, lane=LANE):
    """Pad & pack weights/biases ONCE. Cache the result; reuse every call."""
    w1, w2, w3, w4 = params["w1"], params["w2"], params["w3"], params["w4"]
    b1, b2, b3, b4 = params["b1"], params["b2"], params["b3"], params["b4"]
    S = w1.shape[0]
    H1p = _round_up(w1.shape[1], lane)
    H2p = _round_up(w2.shape[1], lane)
    H3p = _round_up(w3.shape[1], lane)
    Ap = _round_up(w4.shape[1], SUBLANE)          # narrow output: 8, not 128
    assert H1p == H2p == H3p, "hidden widths must pad to the same lane width"
    w23 = jnp.stack([_pad2(w2, H1p, H2p), _pad2(w3, H2p, H3p)])   # (2,128,128)
    b123 = jnp.stack([_pad2(b1.reshape(1, -1), 1, H1p)[0],
                      _pad2(b2.reshape(1, -1), 1, H2p)[0],
                      _pad2(b3.reshape(1, -1), 1, H3p)[0]])       # (3, 128)
    return {
        "w1": _pad2(w1, S, H1p),                 # layer-1 K (=state_dim) unpadded
        "w23": w23,
        "w4": _pad2(w4, H3p, Ap),
        "b123": b123,
        "b4": _pad2(b4.reshape(1, -1), 1, Ap),
    }


@functools.partial(jax.jit, static_argnames=("tile_b",))
def qnet_forward_padded(x, pp, tile_b=2048):
    """x: (B, state_dim) f32; pp: output of prepare_qnet_params.
    Returns the PADDED (Bp, round_up(action_dim, 8)) Q-value matrix."""
    B, S = x.shape
    w1, w23, w4 = pp["w1"], pp["w23"], pp["w4"]
    b123, b4 = pp["b123"], pp["b4"]
    H = w1.shape[1]          # 128
    Ap = w4.shape[1]         # 8

    # Batch tile: big enough to amortize per-step overhead; >= 2 grid steps
    # when the batch allows (so both v7x TensorCores get work); evenly split
    # across the needed tiles so at most SUBLANE-1 padded rows are wasted.
    n_tiles = max(pl.cdiv(B, tile_b), 2) if B > SUBLANE else 1
    tb = min(tile_b, _round_up(pl.cdiv(B, n_tiles), SUBLANE))
    Bp = _round_up(B, tb)
    x_p = jnp.pad(x, ((0, Bp - B), (0, 0)))      # pad batch only; features stay S

    flops = 2 * Bp * (S * H + 2 * H * H + H * Ap)
    bytes_accessed = 4 * (Bp * S + Bp * Ap
                          + S * H + 2 * H * H + H * Ap + 3 * H + Ap)

    resident = lambda shape: pl.BlockSpec(shape, lambda i: (0,) * len(shape))

    return pl.pallas_call(
        _qnet_kernel,
        out_shape=jax.ShapeDtypeStruct((Bp, Ap), jnp.float32),
        grid=(Bp // tb,),
        in_specs=[
            pl.BlockSpec((tb, S), lambda i: (i, 0)),   # x: tiled over batch
            resident((S, H)),                          # w1
            resident((2, H, H)),                       # w2 / w3 stacked
            resident((H, Ap)),                         # w4 (narrow)
            resident((3, H)),                          # b1..b3 stacked
            resident((1, Ap)),                         # b4 (narrow)
        ],
        out_specs=pl.BlockSpec((tb, Ap), lambda i: (i, 0)),
        compiler_params=pltpu.CompilerParams(
            dimension_semantics=("parallel",)),        # shard batch across TCs
        cost_estimate=pl.CostEstimate(
            flops=flops, transcendentals=0, bytes_accessed=bytes_accessed),
    )(x_p, w1, w23, w4, b123, b4)


def qnet_forward(x, padded_params, action_dim, tile_b=2048):
    """Convenience wrapper: padded forward + slice to (B, action_dim).
    Prefer consuming qnet_forward_padded directly inside training loops."""
    out_p = qnet_forward_padded(x, padded_params, tile_b=tile_b)
    return out_p[:x.shape[0], :action_dim]


def init_qnet_params(key, state_dim, action_dim):
    """Deterministic init matching PyTorch Linear default U(-1/sqrt(in), 1/sqrt(in))."""
    dims = [(state_dim, 32), (32, 64), (64, 32), (32, action_dim)]
    params = {}
    for i, (fan_in, fan_out) in enumerate(dims, start=1):
        key, kw, kb = jax.random.split(key, 3)
        bound = 1.0 / (fan_in ** 0.5)
        params[f"w{i}"] = jax.random.uniform(
            kw, (fan_in, fan_out), jnp.float32, -bound, bound)
        params[f"b{i}"] = jax.random.uniform(
            kb, (fan_out,), jnp.float32, -bound, bound)
    return params


def qnet_reference(x, params):
    h = jnp.maximum(x @ params["w1"] + params["b1"], 0.0)
    h = jnp.maximum(h @ params["w2"] + params["b2"], 0.0)
    h = jnp.maximum(h @ params["w3"] + params["b3"], 0.0)
    return h @ params["w4"] + params["b4"]


if __name__ == "__main__":
    state_dim = 4
    action_dim = 5
    batch = 2

    key = jax.random.PRNGKey(0)
    key, kx, kx2 = jax.random.split(key, 3)
    params = init_qnet_params(key, state_dim, action_dim)

    # Pre-pad / pack parameters ONCE; reuse for every forward call.
    padded = prepare_qnet_params(params)
    padded = jax.tree_util.tree_map(jax.block_until_ready, padded)

    # Small batch (single grid step).
    x = jax.random.normal(kx, (batch, state_dim), jnp.float32)
    out = jax.block_until_ready(qnet_forward(x, padded, action_dim))
    ref = qnet_reference(x, params)
    assert out.shape == (batch, action_dim)
    assert jnp.allclose(out, ref, atol=1e-5, rtol=1e-5)

    # Larger batch exercising the multi-step batch grid (>= 2 tiles).
    x_big = jax.random.normal(kx2, (600, state_dim), jnp.float32)
    out_big = jax.block_until_ready(qnet_forward(x_big, padded, action_dim))
    ref_big = qnet_reference(x_big, params)
    assert out_big.shape == (600, action_dim)
    assert jnp.allclose(out_big, ref_big, atol=1e-4, rtol=1e-5)

    print("KERNEL_OK")
</pallas_src>

<mosaic_0001>
module attributes {stable_mosaic.version = 11 : i64} {
  func.func @_qnet_kernel(%arg0: i32, %arg1: memref<8x4xf32, #tpu.memory_space<vmem>>, %arg2: memref<4x128xf32, #tpu.memory_space<vmem>>, %arg3: memref<2x128x128xf32, #tpu.memory_space<vmem>>, %arg4: memref<128x8xf32, #tpu.memory_space<vmem>>, %arg5: memref<3x128xf32, #tpu.memory_space<vmem>>, %arg6: memref<1x8xf32, #tpu.memory_space<vmem>>, %arg7: memref<8x8xf32, #tpu.memory_space<vmem>>) attributes {dimension_semantics = [#tpu.dimension_semantics<parallel>], iteration_bounds = array<i64: 1>, scalar_prefetch = 0 : i64, scratch_operands = 0 : i64, tpu.core_type = #tpu.core_type<tc>, window_params = [{transform_indices = @transform_0, window_bounds = array<i64: 8, 4>}, {pipeline_mode = #tpu.pipeline_mode<synchronous>, transform_indices = @transform_1, window_bounds = array<i64: 4, 128>}, {pipeline_mode = #tpu.pipeline_mode<synchronous>, transform_indices = @transform_2, window_bounds = array<i64: 2, 128, 128>}, {pipeline_mode = #tpu.pipeline_mode<synchronous>, transform_indices = @transform_3, window_bounds = array<i64: 128, 8>}, {pipeline_mode = #tpu.pipeline_mode<synchronous>, transform_indices = @transform_4, window_bounds = array<i64: 3, 128>}, {pipeline_mode = #tpu.pipeline_mode<synchronous>, transform_indices = @transform_5, window_bounds = array<i64: 1, 8>}, {transform_indices = @transform_6, window_bounds = array<i64: 8, 8>}]} {
    %c0 = arith.constant 0 : index
    %c0_0 = arith.constant 0 : index
    %0 = vector.load %arg5[%c0, %c0_0] : memref<3x128xf32, #tpu.memory_space<vmem>>, vector<3x128xf32>
    %c0_1 = arith.constant 0 : index
    %c0_2 = arith.constant 0 : index
    %1 = vector.load %arg1[%c0_1, %c0_2] : memref<8x4xf32, #tpu.memory_space<vmem>>, vector<8x4xf32>
    %c0_3 = arith.constant 0 : index
    %c0_4 = arith.constant 0 : index
    %2 = vector.load %arg2[%c0_3, %c0_4] : memref<4x128xf32, #tpu.memory_space<vmem>>, vector<4x128xf32>
    %cst = arith.constant dense<0.000000e+00> : vector<8x128xf32>
    %3 = tpu.matmul %1, %2, %cst {dimension_numbers = #tpu.dot_dimension_numbers<[1], [0], [0], [1], [0, 0, 1, 1], [], []>} : vector<8x4xf32>, vector<4x128xf32>, vector<8x128xf32> -> vector<8x128xf32>
    %4 = vector.extract_strided_slice %0 {offsets = [0, 0], sizes = [1, 128], strides = [1, 1]} : vector<3x128xf32> to vector<1x128xf32>
    %5 = vector.broadcast %4 : vector<1x128xf32> to vector<8x128xf32>
    %6 = arith.addf %3, %5 : vector<8x128xf32>
    %cst_5 = arith.constant 0.000000e+00 : f32
    %7 = vector.broadcast %cst_5 : f32 to vector<8x128xf32>
    %8 = arith.maximumf %6, %7 : vector<8x128xf32>
    %c0_6 = arith.constant 0 : index
    %c0_7 = arith.constant 0 : index
    %c0_8 = arith.constant 0 : index
    %9 = vector.load %arg3[%c0_6, %c0_7, %c0_8] : memref<2x128x128xf32, #tpu.memory_space<vmem>>, vector<1x128x128xf32>
    %10 = vector.shape_cast %9 : vector<1x128x128xf32> to vector<128x128xf32>
    %cst_9 = arith.constant dense<0.000000e+00> : vector<8x128xf32>
    %11 = tpu.matmul %8, %10, %cst_9 {dimension_numbers = #tpu.dot_dimension_numbers<[1], [0], [0], [1], [0, 0, 1, 1], [], []>} : vector<8x128xf32>, vector<128x128xf32>, vector<8x128xf32> -> vector<8x128xf32>
    %12 = vector.extract_strided_slice %0 {offsets = [1, 0], sizes = [1, 128], strides = [1, 1]} : vector<3x128xf32> to vector<1x128xf32>
    %13 = vector.broadcast %12 : vector<1x128xf32> to vector<8x128xf32>
    %14 = arith.addf %11, %13 : vector<8x128xf32>
    %cst_10 = arith.constant 0.000000e+00 : f32
    %15 = vector.broadcast %cst_10 : f32 to vector<8x128xf32>
    %16 = arith.maximumf %14, %15 : vector<8x128xf32>
    %c1 = arith.constant 1 : index
    %c0_11 = arith.constant 0 : index
    %c0_12 = arith.constant 0 : index
    %17 = vector.load %arg3[%c1, %c0_11, %c0_12] : memref<2x128x128xf32, #tpu.memory_space<vmem>>, vector<1x128x128xf32>
    %18 = vector.shape_cast %17 : vector<1x128x128xf32> to vector<128x128xf32>
    %cst_13 = arith.constant dense<0.000000e+00> : vector<8x128xf32>
    %19 = tpu.matmul %16, %18, %cst_13 {dimension_numbers = #tpu.dot_dimension_numbers<[1], [0], [0], [1], [0, 0, 1, 1], [], []>} : vector<8x128xf32>, vector<128x128xf32>, vector<8x128xf32> -> vector<8x128xf32>
    %20 = vector.extract_strided_slice %0 {offsets = [2, 0], sizes = [1, 128], strides = [1, 1]} : vector<3x128xf32> to vector<1x128xf32>
    %21 = vector.broadcast %20 : vector<1x128xf32> to vector<8x128xf32>
    %22 = arith.addf %19, %21 : vector<8x128xf32>
    %cst_14 = arith.constant 0.000000e+00 : f32
    %23 = vector.broadcast %cst_14 : f32 to vector<8x128xf32>
    %24 = arith.maximumf %22, %23 : vector<8x128xf32>
    %c0_15 = arith.constant 0 : index
    %c0_16 = arith.constant 0 : index
    %25 = vector.load %arg4[%c0_15, %c0_16] : memref<128x8xf32, #tpu.memory_space<vmem>>, vector<128x8xf32>
    %cst_17 = arith.constant dense<0.000000e+00> : vector<8x8xf32>
    %26 = tpu.matmul %24, %25, %cst_17 {dimension_numbers = #tpu.dot_dimension_numbers<[1], [0], [0], [1], [0, 0, 1, 1], [], []>} : vector<8x128xf32>, vector<128x8xf32>, vector<8x8xf32> -> vector<8x8xf32>
    %c0_18 = arith.constant 0 : index
    %c0_19 = arith.constant 0 : index
    %27 = vector.load %arg6[%c0_18, %c0_19] : memref<1x8xf32, #tpu.memory_space<vmem>>, vector<1x8xf32>
    %28 = vector.broadcast %27 : vector<1x8xf32> to vector<8x8xf32>
    %29 = arith.addf %26, %28 : vector<8x8xf32>
    %c0_20 = arith.constant 0 : index
    %c0_21 = arith.constant 0 : index
    %30 = vector.load %arg7[%c0_20, %c0_21] : memref<8x8xf32, #tpu.memory_space<vmem>>, vector<8x8xf32>
    tpu.vector_store %arg7[%c0_20, %c0_21], %29 {strides = array<i32>} : memref<8x8xf32, #tpu.memory_space<vmem>>, vector<8x8xf32>,
    return
  }
  func.func @transform_0(%arg0: i32) -> (i32, i32) {
    %c0_i32 = arith.constant 0 : i32
    %c0_i32_0 = arith.constant 0 : i32
    return %arg0, %c0_i32 : i32, i32
  }
  func.func @transform_1(%arg0: i32) -> (i32, i32) {
    %c0_i32 = arith.constant 0 : i32
    %c0_i32_0 = arith.constant 0 : i32
    %c0_i32_1 = arith.constant 0 : i32
    return %c0_i32, %c0_i32_0 : i32, i32
  }
  func.func @transform_2(%arg0: i32) -> (i32, i32, i32) {
    %c0_i32 = arith.constant 0 : i32
    %c0_i32_0 = arith.constant 0 : i32
    %c0_i32_1 = arith.constant 0 : i32
    %c0_i32_2 = arith.constant 0 : i32
    return %c0_i32, %c0_i32_0, %c0_i32_1 : i32, i32, i32
  }
  func.func @transform_3(%arg0: i32) -> (i32, i32) {
    %c0_i32 = arith.constant 0 : i32
    %c0_i32_0 = arith.constant 0 : i32
    %c0_i32_1 = arith.constant 0 : i32
    return %c0_i32, %c0_i32_0 : i32, i32
  }
  func.func @transform_4(%arg0: i32) -> (i32, i32) {
    %c0_i32 = arith.constant 0 : i32
    %c0_i32_0 = arith.constant 0 : i32
    %c0_i32_1 = arith.constant 0 : i32
    return %c0_i32, %c0_i32_0 : i32, i32
  }
  func.func @transform_5(%arg0: i32) -> (i32, i32) {
    %c0_i32 = arith.constant 0 : i32
    %c0_i32_0 = arith.constant 0 : i32
    %c0_i32_1 = arith.constant 0 : i32
    return %c0_i32, %c0_i32_0 : i32, i32
  }
  func.func @transform_6(%arg0: i32) -> (i32, i32) {
    %c0_i32 = arith.constant 0 : i32
    %c0_i32_0 = arith.constant 0 : i32
    return %arg0, %c0_i32 : i32, i32
  }
}

</mosaic_0001>

<bundles_post_ra>
// kernel: qnet_forward_padded.1
= control target key start
LH: loop header
LB: loop body
LE: loop exit
PB: predicated region body
PF: predicated region fallthrough
CT: control target
= control target key end

     0   :  { %11 = vsyncpa [#allocation3], 0  ;;  %s869_s0 = inlined_call_operand.vmem [shape: f32[8,4], index: 0, kind: input, shape index: {}]   ;;  %s870_s1 = inlined_call_operand.vmem [shape: f32[4,128], index: 1, kind: input, shape index: {}]   ;;  %s871_s2 = inlined_call_operand.hbm [shape: f32[2,128,128], index: 2, kind: input, shape index: {}]   ;;  %s872_s3 = inlined_call_operand.vmem [shape: f32[128,8], index: 3, kind: input, shape index: {}]   ;;  %s873_s4 = inlined_call_operand.vmem [shape: f32[3,128], index: 4, kind: input, shape index: {}]   ;;  %s874_s5 = inlined_call_operand.vmem [shape: f32[1,8], index: 5, kind: input, shape index: {}]   ;;  %s875_s6 = inlined_call_operand.hbm [shape: f32[8,8], index: 6, kind: output, shape index: {}]  }
   0x1   :  { %12 = vsyncpa [#allocation4], 0  ;;  %s710_s21 = smov [#allocation2]   ;;  %s662_s25 = scalar_lea.hbm %s871_s2, 4096 }
   0x2   :  { %s22_s22 = sshll.u32 %s710_s21, 4  ;;  %p663_p0 = scmp.ne.s32.totalorder %s871_s2, %s662_s25  ;;  %s23_s22 = int_to_ptr.vmem [resolvable:$true] %s22_s22 }
   0x3   :  { %p666_p1 = scmp.lt.u32.totalorder %s662_s25, %s871_s2 }
   0x5   :  { %p668_p2 = pnand %p666_p1, %p663_p0 }
   0x7   :  { %671 = shalt.err (!%p668_p2)
}
   0x8   :  { %s672_s30 = scalar_lea.vmem %s23_s22, 4096  ;;  %p677_p4 = scmp.lt.s32.totalorder %s23_s22, %s23_s22 }
   0x9   :  { %p673_p3 = scmp.ne.s32.totalorder %s23_s22, %s672_s30  ;;  %p678_p5 = scmp.lt.s32.totalorder %s672_s30, %s672_s30 }
   0xb   :  { %p679_p6 = por %p678_p5, %p677_p4 }
   0xd   :  { %p680_p7 = pnand %p679_p6, %p673_p3 }
   0xf   :  { %683 = shalt.err (!%p680_p7)
}
  0x10   :  { %s711_s7 = smov 128   ;;  %s712_s8 = smov 8  }
  0x11   :  { %28 = dma.hbm_to_vmem [thread:$0]  %s871_s2, 4096, %s23_s22, [#allocation3], %s711_s7, %s711_s7, %s712_s8  }
  0x12   :  { %706 = dma.done.wait [#allocation3], 4096  }
  0x13   :  { %707 = vsyncadd [#allocation3], 4294963200  ;;  %v713_v0 = vmov 0.0   ;;  %vm714_vm0 = vmmov 0   ;;  %v715_v1 = vmov 0.0|0.0   ;;  %vm49_vm1 = vcmask 1043456  }
  0x14   :  { %473 = vmatprep.subr.mxu0 %v713_v0  ;;  %475 = vmatprep.mubr.msk.f32.mxu0 %vm714_vm0, %v713_v0  ;;  %vm45_vm2 = vcmask 31744   ;;  %v40_v2 = vld [vmem:[%s870_s1] sm:$0xf]  ;;  %v124_v4 = vld [vmem:[#allocation2] sm:$0xff]  ;;  %v125_v5 = vld [vmem:[#allocation2 + $0x8] sm:$0xff]  ;;  %v41_v49 = vlaneseq  ;;  %s716_s19 = smov [#allocation5]  }
  0x15   :  { %583 = vmatprep.subr.bf16.mxu1 %v715_v1  ;;  %510 = vmatprep.mubr.msk.f32.mxu1 %vm714_vm0, %v713_v0  ;;  %v39_v3 = vld [vmem:[%s869_s0] sm:$0xff]  ;;  %v127_v7 = vld [vmem:[#allocation2 + $0x18] sm:$0xff]  ;;  %v584_v8 = vpack.c.bf16 %v125_v5, %v124_v4  ;;  %v128_v10 = vld [vmem:[#allocation2 + $0x20] sm:$0xff]  ;;  %s408_s20 = sshll.u32 %s716_s19, 4  ;;  %vm400_vm3 = vcmask 64512   ;;  %s409_s20 = int_to_ptr.vmem [resolvable:$true] %s408_s20 }
  0x16   :  { %474 = vmatpush3.msk.msra.mxu0 %vm49_vm1, %v40_v2  ;;  %v126_v6 = vld [vmem:[#allocation2 + $0x10] sm:$0xff]  ;;  %v129_v11 = vld [vmem:[#allocation2 + $0x28] sm:$0xff]  ;;  %v131_v14 = vld [vmem:[#allocation2 + $0x38] sm:$0xff]  ;;  %v42_v50 = vshrl.u32 %v41_v49, 7  ;;  %p689_p9 = scmp.lt.s32.totalorder %s409_s20, %s409_s20 }
  0x17   :  { %476 = vmatmul.mubr.msk.f32.vlgmr.msra.gmra.mrb[0].mxu0 %vm45_vm2, %v39_v3  ;;  %607 = vmatprep.subr.bf16.mxu0 %v715_v1  ;;  %v587_v9 = vpack.c.bf16 %v127_v7, %v126_v6  ;;  %v590_v12 = vpack.c.bf16 %v129_v11, %v128_v10  ;;  %v130_v13 = vld [vmem:[#allocation2 + $0x30] sm:$0xff]  ;;  %v132_v16 = vld [vmem:[#allocation2 + $0x40] sm:$0xff]  ;;  %v133_v17 = vld [vmem:[#allocation2 + $0x48] sm:$0xff] }
  0x18   :  { %545 = vmatprep.mubr.msk.f32.mxu0 %vm714_vm0, %v713_v0  ;;  %585 = vmatpush3.bf16.msra.mxu1 %v584_v8  ;;  %v593_v15 = vpack.c.bf16 %v131_v14, %v130_v13  ;;  %v596_v18 = vpack.c.bf16 %v133_v17, %v132_v16  ;;  %v134_v19 = vld [vmem:[#allocation2 + $0x50] sm:$0xff]  ;;  %v135_v20 = vld [vmem:[#allocation2 + $0x58] sm:$0xff]  ;;  %v136_v22 = vld [vmem:[#allocation2 + $0x60] sm:$0xff]  ;;  %v43_v51 = vsub.s32 0, %v42_v50 }
  0x19   :  { %586 = vmatprep.subr.bf16.mxu1 %v715_v1  ;;  %v599_v21 = vpack.c.bf16 %v135_v20, %v134_v19  ;;  %v137_v23 = vld [vmem:[#allocation2 + $0x68] sm:$0xff]  ;;  %v138_v25 = vld [vmem:[#allocation2 + $0x70] sm:$0xff]  ;;  %v139_v26 = vld [vmem:[#allocation2 + $0x78] sm:$0xff]  ;;  %v142_v19 = vsub.s32 1, %v42_v50 }
  0x1a   :  { %v602_v24 = vpack.c.bf16 %v137_v23, %v136_v22  ;;  %v605_v27 = vpack.c.bf16 %v139_v26, %v138_v25  ;;  %v216_v28 = vld [vmem:[#allocation2 + $0x80] sm:$0xff]  ;;  %v217_v29 = vld [vmem:[#allocation2 + $0x88] sm:$0xff]  ;;  %v218_v30 = vld [vmem:[#allocation2 + $0x90] sm:$0xff] }
  0x1b   :  { %v608_v31 = vpack.c.bf16 %v217_v29, %v216_v28  ;;  %v219_v32 = vld [vmem:[#allocation2 + $0x98] sm:$0xff]  ;;  %v220_v34 = vld [vmem:[#allocation2 + $0xa0] sm:$0xff]  ;;  %v221_v35 = vld [vmem:[#allocation2 + $0xa8] sm:$0xff]  ;;  %v234_v28 = vsub.s32 2, %v42_v50 }
  0x1c   :  { %588 = vmatpush3.bf16.msra.mxu1 %v587_v9  ;;  %v611_v33 = vpack.c.bf16 %v219_v32, %v218_v30  ;;  %v614_v36 = vpack.c.bf16 %v221_v35, %v220_v34  ;;  %v222_v37 = vld [vmem:[#allocation2 + $0xb0] sm:$0xff]  ;;  %v223_v38 = vld [vmem:[#allocation2 + $0xb8] sm:$0xff]  ;;  %v224_v40 = vld [vmem:[#allocation2 + $0xc0] sm:$0xff] }
  0x1d   :  { %589 = vmatprep.subr.bf16.mxu1 %v715_v1  ;;  %609 = vmatpush3.bf16.msra.mxu0 %v608_v31  ;;  %v617_v39 = vpack.c.bf16 %v223_v38, %v222_v37  ;;  %v225_v41 = vld [vmem:[#allocation2 + $0xc8] sm:$0xff]  ;;  %v226_v43 = vld [vmem:[#allocation2 + $0xd0] sm:$0xff]  ;;  %v227_v44 = vld [vmem:[#allocation2 + $0xd8] sm:$0xff] }
  0x1e   :  { %610 = vmatprep.subr.bf16.mxu0 %v715_v1  ;;  %v620_v42 = vpack.c.bf16 %v225_v41, %v224_v40  ;;  %v623_v45 = vpack.c.bf16 %v227_v44, %v226_v43  ;;  %v228_v46 = vld [vmem:[#allocation2 + $0xe0] sm:$0xff]  ;;  %v229_v47 = vld [vmem:[#allocation2 + $0xe8] sm:$0xff]  ;;  %v38_v52 = vld [vmem:[%s873_s4] sm:$0x7] }
  0x1f   :  { %v626_v48 = vpack.c.bf16 %v229_v47, %v228_v46  ;;  %v44_v53 = vrot.slane %v38_v52, %v43_v51  ;;  %v230_v58 = vld [vmem:[#allocation2 + $0xf0] sm:$0xff]  ;;  %v231_v59 = vld [vmem:[#allocation2 + $0xf8] sm:$0xff]  ;;  %v309_v63 = vld [vmem:[%s872_s3 + $0x10] sm:$0xff]  ;;  %v143_v20 = vrot.slane %v38_v52, %v142_v19  ;;  %v235_v29 = vrot.slane %v38_v52, %v234_v28 }
  0x20   :  { %591 = vmatpush3.bf16.msra.mxu1 %v590_v12  ;;  %v629_v60 = vpack.c.bf16 %v231_v59, %v230_v58  ;;  %v307_v61 = vld [vmem:[%s872_s3] sm:$0xff]  ;;  %v308_v62 = vld [vmem:[%s872_s3 + $0x8] sm:$0xff]  ;;  %v313_v7 = vld [vmem:[%s872_s3 + $0x30] sm:$0xff] }
  0x21   :  { %592 = vmatprep.subr.bf16.mxu1 %v715_v1  ;;  %612 = vmatpush3.bf16.msra.mxu0 %v611_v33  ;;  %v632_v2 = vpack.c.bf16 %v308_v62, %v307_v61  ;;  %v311_v4 = vld [vmem:[%s872_s3 + $0x20] sm:$0xff]  ;;  %v312_v5 = vld [vmem:[%s872_s3 + $0x28] sm:$0xff]  ;;  %v314_v8 = vld [vmem:[%s872_s3 + $0x38] sm:$0xff] }
  0x22   :  { %613 = vmatprep.subr.bf16.mxu0 %v715_v1  ;;  %v638_v6 = vpack.c.bf16 %v312_v5, %v311_v4  ;;  %v641_v9 = vpack.c.bf16 %v314_v8, %v313_v7  ;;  %v315_v10 = vld [vmem:[%s872_s3 + $0x40] sm:$0xff]  ;;  %v316_v11 = vld [vmem:[%s872_s3 + $0x48] sm:$0xff]  ;;  %v317_v13 = vld [vmem:[%s872_s3 + $0x50] sm:$0xff] }
  0x23   :  { %v644_v12 = vpack.c.bf16 %v316_v11, %v315_v10  ;;  %v318_v14 = vld [vmem:[%s872_s3 + $0x58] sm:$0xff]  ;;  %v319_v16 = vld [vmem:[%s872_s3 + $0x60] sm:$0xff]  ;;  %v320_v17 = vld [vmem:[%s872_s3 + $0x68] sm:$0xff] }
  0x24   :  { %594 = vmatpush3.bf16.msra.mxu1 %v593_v15  ;;  %v647_v15 = vpack.c.bf16 %v318_v14, %v317_v13  ;;  %v321_v25 = vld [vmem:[%s872_s3 + $0x70] sm:$0xff]  ;;  %v322_v26 = vld [vmem:[%s872_s3 + $0x78] sm:$0xff]  ;;  %v419_v33 = vld [vmem:[%s874_s5] ss:$0 sm:$0xff] }
  0x25   :  { %595 = vmatprep.subr.bf16.mxu1 %v715_v1  ;;  %615 = vmatpush3.bf16.msra.mxu0 %v614_v36 }
  0x26   :  { %616 = vmatprep.subr.bf16.mxu0 %v715_v1 }
  0x28   :  { %597 = vmatpush3.bf16.msra.mxu1 %v596_v18  ;;  %v650_v18 = vpack.c.bf16 %v320_v17, %v319_v16 }
  0x29   :  { %598 = vmatprep.subr.bf16.mxu1 %v715_v1  ;;  %618 = vmatpush3.bf16.msra.mxu0 %v617_v39 }
  0x2a   :  { %619 = vmatprep.subr.bf16.mxu0 %v715_v1 }
  0x2c   :  { %600 = vmatpush3.bf16.msra.mxu1 %v599_v21 }
  0x2d   :  { %601 = vmatprep.subr.bf16.mxu1 %v715_v1  ;;  %621 = vmatpush3.bf16.msra.mxu0 %v620_v42 }
  0x2e   :  { %622 = vmatprep.subr.bf16.mxu0 %v715_v1 }
  0x30   :  { %603 = vmatpush3.bf16.msra.mxu1 %v602_v24 }
  0x31   :  { %604 = vmatprep.subr.bf16.mxu1 %v715_v1  ;;  %624 = vmatpush3.bf16.msra.mxu0 %v623_v45 }
  0x32   :  { %625 = vmatprep.subr.bf16.mxu0 %v715_v1 }
  0x34   :  { %606 = vmatpush3.bf16.msra.mxu1 %v605_v27  ;;  %v653_v27 = vpack.c.bf16 %v322_v26, %v321_v25 }
  0x35   :  { %631 = vmatprep.subr.bf16.mxu1 %v715_v1  ;;  %627 = vmatpush3.bf16.msra.mxu0 %v626_v48 }
  0x36   :  { %628 = vmatprep.subr.bf16.mxu0 %v715_v1 }
  0x39   :  { %630 = vmatpush3.bf16.msra.mxu0 %v629_v60 }
  0xea   :  { %v119_v54 = vpop.f32.mrb[0].mxu0 }
  0xeb   :  { %v120_v55 = vadd.f32 %v119_v54, %v44_v53  ;;  %v477_v56 = vpop.f32.mrb[1].mxu0 }
  0xed   :  { %v123_v57 = vmax.f32 %v120_v55, 0.0 }
  0xef   :  { %511 = vmatmul.mubr.f32.vlgmr.msra.gmra.mrb[0].mxu1 %v123_v57 }
  0xf0   :  { %580 = vmatprep.mubr.msk.f32.mxu1 %vm714_vm0, %v713_v0  ;;  %v310_v0 = vld [vmem:[%s872_s3 + $0x18] sm:$0xff]  ;;  %633 = vmatpush3.bf16.msra.mxu1 %v632_v2  ;;  %s684_s3 = scalar_lea.vmem %s409_s20, 128 }
  0xf1   :  { %v635_v3 = vpack.c.bf16 %v310_v0, %v309_v63  ;;  %634 = vmatprep.subr.bf16.mxu1 %v715_v1  ;;  %p685_p8 = scmp.ne.s32.totalorder %s409_s20, %s684_s3  ;;  %p690_p10 = scmp.lt.s32.totalorder %s684_s3, %s684_s3 }
  0xf3   :  { %p691_p11 = por %p690_p10, %p689_p9 }
  0xf4   :  { %636 = vmatpush3.bf16.msra.mxu1 %v635_v3 }
  0xf5   :  { %637 = vmatprep.subr.bf16.mxu1 %v715_v1  ;;  %p692_p12 = pnand %p691_p11, %p685_p8 }
  0xf8   :  { %639 = vmatpush3.bf16.msra.mxu1 %v638_v6 }
  0xf9   :  { %640 = vmatprep.subr.bf16.mxu1 %v715_v1 }
  0xfc   :  { %642 = vmatpush3.bf16.msra.mxu1 %v641_v9 }
  0xfd   :  { %643 = vmatprep.subr.bf16.mxu1 %v715_v1 }
 0x100   :  { %645 = vmatpush3.bf16.msra.mxu1 %v644_v12 }
 0x101   :  { %646 = vmatprep.subr.bf16.mxu1 %v715_v1 }
 0x104   :  { %648 = vmatpush3.bf16.msra.mxu1 %v647_v15 }
 0x105   :  { %649 = vmatprep.subr.bf16.mxu1 %v715_v1 }
 0x108   :  { %651 = vmatpush3.bf16.msra.mxu1 %v650_v18 }
 0x109   :  { %652 = vmatprep.subr.bf16.mxu1 %v715_v1 }
 0x10c   :  { %654 = vmatpush3.bf16.msra.mxu1 %v653_v27 }
 0x1c2   :  { %v210_v21 = vpop.f32.mrb[0].mxu1 }
 0x1c3   :  { %v211_v22 = vadd.f32 %v210_v21, %v143_v20  ;;  %v512_v23 = vpop.f32.mrb[1].mxu1 }
 0x1c5   :  { %v214_v24 = vmax.f32 %v211_v22, 0.0 }
 0x1c7   :  { %546 = vmatmul.mubr.f32.vlgmr.msra.gmra.mrb[2].mxu0 %v214_v24 }
 0x29a   :  { %v302_v1 = vpop.f32.mrb[2].mxu0 }
 0x29b   :  { %v303_v30 = vadd.f32 %v302_v1, %v235_v29  ;;  %v547_v31 = vpop.f32.mrb[3].mxu0 }
 0x29d   :  { %v306_v32 = vmax.f32 %v303_v30, 0.0 }
 0x29f   :  { %581 = vmatmul.mubr.f32.vlgmr.msra.gmra.mrb[2].mxu1 %v306_v32 }
 0x372   :  { %v396_v34 = vpop.f32.mrb[2].mxu1 }
 0x373   :  { %v397_v35 = vadd.f32 %v419_v33, %v396_v34  ;;  %v582_v36 = vpop.f32.mrb[3].mxu1 }
 0x375   :  { %401 = vst.msk [vmem:[#allocation5] sm:$0xff] %vm400_vm3, %v397_v35 }
 0x376   :  { %695 = shalt.err (!%p692_p12)
}
 0x377   :  { %s696_s23 = scalar_lea.hbm %s875_s6, 128 }
 0x378   :  { %p697_p13 = scmp.ne.s32.totalorder %s875_s6, %s696_s23  ;;  %p700_p0 = scmp.lt.u32.totalorder %s696_s23, %s875_s6 }
 0x37a   :  { %p702_p1 = pnand %p700_p0, %p697_p13 }
 0x37c   :  { %705 = shalt.err (!%p702_p1)
}
 0x37d   :  { %411 = dma.vmem_to_hbm [thread:$0]  %s409_s20, 128, %s875_s6, [#allocation4]  }
 0x37e   :  { %708 = dma.done.wait [#allocation4], 128  }
 0x37f   :  { %709 = vsyncadd [#allocation4], 4294967168 }
 0x380   :  { %415 = vsyncpa [#allocation3], 1 }
 0x381   :  { %416 = vsyncpa [#allocation4], 1 }

</bundles_post_ra>
